<compile_context>
chip_gen: v6e
topology: v6e:2x2x1
jax: 0.10.0
libtpu: 0.0.40
codegen_flags: <defaults>
</compile_context>

<pallas_src>
import functools

import jax
import jax.numpy as jnp
from jax import lax
from jax.experimental import pallas as pl
from jax.experimental.pallas import tpu as pltpu


# ----------------------------------------------------------------------------
# Pallas kernel: entire batch in one step.  All activations are channels-major
# (C, N*H*W) with batch*spatial on the lane axis.
#   cbr_1: 1x1 conv (BN folded) + bias + ReLU
#   cbr_2: 3x3 dilated conv as 9 tap-dots accumulated in f32 + bias + ReLU
#   cb_3 : 1x1 conv (BN folded) + bias
#   out  : ReLU(cb_3 + residual)
# ----------------------------------------------------------------------------
def _bottleneck_kernel(x_ref, w1_ref, b1_ref, w2_ref, b2_ref, w3_ref, b3_ref,
                       mask_ref, out_ref, *, W, D, NHW):
    # ---- cbr_1: 1x1 conv + (folded) BN + ReLU ------------------------------
    y1 = jnp.dot(w1_ref[...], x_ref[...], preferred_element_type=jnp.float32)
    y1 = jnp.maximum(y1 + b1_ref[...], 0.0)                  # (Cmid_p, NHW)

    # ---- cbr_2: 3x3 dilated conv via 9 accumulated tap matmuls -------------
    # Tap (ky, kx) reads y1 at flattened lane offset o = ((ky-1)*W + (kx-1))*D.
    # pltpu.roll (XLU) shifts along the lane axis; precomputed masks zero every
    # out-of-image (and therefore every cross-image) read.  Center tap (t==4)
    # has o == 0 and an all-ones mask, so it seeds the accumulator directly.
    masks = mask_ref[...]                                     # (9, NHW)
    acc = jnp.dot(w2_ref[4], y1, preferred_element_type=jnp.float32)
    for ky in range(3):
        for kx in range(3):
            t = ky * 3 + kx
            if t == 4:
                continue
            o = ((ky - 1) * W + (kx - 1)) * D
            if o == 0:
                shifted = y1
            else:
                # rolled[p] = y1[(p + o) mod NHW]
                shifted = pltpu.roll(y1, shift=(-o) % NHW, axis=1)
            acc = acc + jnp.dot(w2_ref[t], shifted * masks[t:t + 1],
                                preferred_element_type=jnp.float32)
    y2 = jnp.maximum(acc + b2_ref[...], 0.0)                  # (Cmid_p, NHW)

    # ---- cb_3: 1x1 conv + (folded) BN ---------------------------------------
    y3 = jnp.dot(w3_ref[...], y2, preferred_element_type=jnp.float32)
    y3 = y3 + b3_ref[...]                                     # (Cin, NHW)

    # ---- residual add + ReLU (residual re-read here, lane-dense store) -----
    out_ref[...] = jnp.maximum(y3 + x_ref[...], 0.0)


# ----------------------------------------------------------------------------
# Wrapper: fold BN into weights/biases, pad Cmid to a sublane multiple,
# precompute boundary masks, call Pallas.  Input/output are NCHW.
# ----------------------------------------------------------------------------
def _fold_params(p, cmid_p, eps=1e-5):
    def fold(gamma, beta, mean, var):
        s = gamma / jnp.sqrt(var + eps)
        return s, beta - mean * s

    s1, b1 = fold(*p["bn1"])
    s2, b2 = fold(*p["bn2"])
    s3, b3 = fold(*p["bn3"])

    cmid = p["w1"].shape[0]
    pad = cmid_p - cmid

    # 1x1 convs: (O, I, 1, 1) -> (O, I); fold BN scale into output rows.
    w1m = p["w1"][:, :, 0, 0] * s1[:, None]                       # (Cmid, Cin)
    w3m = p["w3"][:, :, 0, 0] * s3[:, None]                       # (Cin, Cmid)
    # 3x3 conv: OIHW -> per-tap (9, O, I); fold BN scale into O.
    w2t = jnp.transpose(p["w2"], (2, 3, 0, 1)).reshape(9, cmid, cmid)
    w2t = w2t * s2[None, :, None]

    # Zero-pad Cmid to a multiple of 8 sublanes.  Padded mid-channels carry
    # exactly 0 through bias(0)+ReLU and contribute nothing downstream.
    w1m = jnp.pad(w1m, ((0, pad), (0, 0)))
    b1p = jnp.pad(b1, (0, pad))[:, None]
    w2t = jnp.pad(w2t, ((0, 0), (0, pad), (0, pad)))
    b2p = jnp.pad(b2, (0, pad))[:, None]
    w3m = jnp.pad(w3m, ((0, 0), (0, pad)))
    b3p = b3[:, None]
    return w1m, b1p, w2t, b2p, w3m, b3p


def _make_tap_masks(H, W, D):
    """(9, H*W) float mask: 1 where the dilated tap reads inside the image."""
    p = jnp.arange(H * W)
    r, c = p // W, p % W
    rows = []
    for ky in range(3):
        for kx in range(3):
            dy, dx = (ky - 1) * D, (kx - 1) * D
            ok = ((r + dy >= 0) & (r + dy < H) & (c + dx >= 0) & (c + dx < W))
            rows.append(ok.astype(jnp.float32))
    return jnp.stack(rows)                                    # (9, HW)


def bottleneck_identity_psp(x_nchw, params, dilation):
    """x_nchw: (N, Cin, H, W) float32 -> (N, Cin, H, W) float32."""
    N, Cin, H, W = x_nchw.shape
    Cmid = params["w1"].shape[0]
    D = int(dilation)
    HW = H * W
    NHW = N * HW
    Cmid_p = ((Cmid + 7) // 8) * 8                            # sublane-tile pad

    w1m, b1, w2t, b2, w3m, b3 = _fold_params(params, Cmid_p)
    masks = jnp.tile(_make_tap_masks(H, W, D), (1, N))        # (9, N*HW)

    # Channels-major with batch folded into the lane axis: (Cin, N*H*W).
    x2 = jnp.transpose(x_nchw.reshape(N, Cin, HW), (1, 0, 2)).reshape(Cin, NHW)

    kernel = functools.partial(_bottleneck_kernel, W=W, D=D, NHW=NHW)

    def full(shape):
        return pl.BlockSpec(shape, lambda i, _nd=len(shape): (0,) * _nd)

    out = pl.pallas_call(
        kernel,
        out_shape=jax.ShapeDtypeStruct((Cin, NHW), jnp.float32),
        grid=(1,),
        in_specs=[
            full((Cin, NHW)),                                 # x (residual)
            full((Cmid_p, Cin)), full((Cmid_p, 1)),           # w1', b1
            full((9, Cmid_p, Cmid_p)), full((Cmid_p, 1)),     # w2' taps, b2
            full((Cin, Cmid_p)), full((Cin, 1)),              # w3', b3
            full((9, NHW)),                                   # tap masks
        ],
        out_specs=full((Cin, NHW)),
        compiler_params=pltpu.CompilerParams(
            dimension_semantics=("arbitrary",)),
    )(x2, w1m, b1, w2t, b2, w3m, b3, masks)

    return jnp.transpose(out.reshape(Cin, N, HW), (1, 0, 2)).reshape(N, Cin, H, W)


# ----------------------------------------------------------------------------
# Deterministic parameter construction (PyTorch conventions: OIHW conv weights,
# BatchNorm (gamma, beta, running_mean, running_var) per layer).
# ----------------------------------------------------------------------------
def make_params(key, in_channels, mid_channels):
    ks = jax.random.split(key, 6)

    def bn_params(k, c):
        kg, kb, km, kv = jax.random.split(k, 4)
        gamma = jax.random.uniform(kg, (c,), jnp.float32, 0.5, 1.5)
        beta = 0.1 * jax.random.normal(kb, (c,), jnp.float32)
        mean = 0.1 * jax.random.normal(km, (c,), jnp.float32)
        var = jax.random.uniform(kv, (c,), jnp.float32, 0.5, 1.5)
        return gamma, beta, mean, var

    w1 = 0.2 * jax.random.normal(ks[0], (mid_channels, in_channels, 1, 1), jnp.float32)
    w2 = 0.2 * jax.random.normal(ks[1], (mid_channels, mid_channels, 3, 3), jnp.float32)
    w3 = 0.2 * jax.random.normal(ks[2], (in_channels, mid_channels, 1, 1), jnp.float32)
    return dict(w1=w1, w2=w2, w3=w3,
                bn1=bn_params(ks[3], mid_channels),
                bn2=bn_params(ks[4], mid_channels),
                bn3=bn_params(ks[5], in_channels))


# ----------------------------------------------------------------------------
# Pure-JAX reference (NCHW, eval-mode BatchNorm), mirrors the PyTorch module.
# ----------------------------------------------------------------------------
def ref_forward(x, p, d, eps=1e-5):
    def bn(y, gamma, beta, mean, var):
        s = gamma / jnp.sqrt(var + eps)
        return y * s[None, :, None, None] + (beta - mean * s)[None, :, None, None]

    dn = ("NCHW", "OIHW", "NCHW")
    y = lax.conv_general_dilated(x, p["w1"], (1, 1), "VALID", dimension_numbers=dn)
    y = jnp.maximum(bn(y, *p["bn1"]), 0.0)
    y = lax.conv_general_dilated(y, p["w2"], (1, 1), ((d, d), (d, d)),
                                 rhs_dilation=(d, d), dimension_numbers=dn)
    y = jnp.maximum(bn(y, *p["bn2"]), 0.0)
    y = lax.conv_general_dilated(y, p["w3"], (1, 1), "VALID", dimension_numbers=dn)
    y = bn(y, *p["bn3"])
    return jnp.maximum(y + x, 0.0)


if __name__ == "__main__":
    N, Cin, H, W = 2, 8, 16, 16
    Cmid, dilation = 4, 2

    key = jax.random.PRNGKey(0)
    kx, kp = jax.random.split(key)

    x = jax.random.normal(kx, (N, Cin, H, W), jnp.float32)   # NCHW like PyTorch
    params = make_params(kp, Cin, Cmid)

    out = bottleneck_identity_psp(x, params, dilation)
    out = jax.block_until_ready(out)

    ref = ref_forward(x, params, dilation)
    assert out.shape == (N, Cin, H, W)
    max_err = float(jnp.max(jnp.abs(out - ref)))
    assert jnp.allclose(out, ref, atol=2e-2, rtol=2e-2), max_err

    print("KERNEL_OK")
</pallas_src>

<mosaic_0001>
module attributes {stable_mosaic.version = 11 : i64} {
  func.func @_bottleneck_kernel(%arg0: i32, %arg1: memref<8x512xf32, #tpu.memory_space<vmem>>, %arg2: memref<8x8xf32, #tpu.memory_space<vmem>>, %arg3: memref<8x1xf32, #tpu.memory_space<vmem>>, %arg4: memref<9x8x8xf32, #tpu.memory_space<vmem>>, %arg5: memref<8x1xf32, #tpu.memory_space<vmem>>, %arg6: memref<8x8xf32, #tpu.memory_space<vmem>>, %arg7: memref<8x1xf32, #tpu.memory_space<vmem>>, %arg8: memref<9x512xf32, #tpu.memory_space<vmem>>, %arg9: memref<8x512xf32, #tpu.memory_space<vmem>>) attributes {dimension_semantics = [#tpu.dimension_semantics<arbitrary>], iteration_bounds = array<i64: 1>, scalar_prefetch = 0 : i64, scratch_operands = 0 : i64, tpu.core_type = #tpu.core_type<tc>, window_params = [{pipeline_mode = #tpu.pipeline_mode<synchronous>, transform_indices = @transform_0, window_bounds = array<i64: 8, 512>}, {pipeline_mode = #tpu.pipeline_mode<synchronous>, transform_indices = @transform_1, window_bounds = array<i64: 8, 8>}, {pipeline_mode = #tpu.pipeline_mode<synchronous>, transform_indices = @transform_2, window_bounds = array<i64: 8, 1>}, {pipeline_mode = #tpu.pipeline_mode<synchronous>, transform_indices = @transform_3, window_bounds = array<i64: 9, 8, 8>}, {pipeline_mode = #tpu.pipeline_mode<synchronous>, transform_indices = @transform_4, window_bounds = array<i64: 8, 1>}, {pipeline_mode = #tpu.pipeline_mode<synchronous>, transform_indices = @transform_5, window_bounds = array<i64: 8, 8>}, {pipeline_mode = #tpu.pipeline_mode<synchronous>, transform_indices = @transform_6, window_bounds = array<i64: 8, 1>}, {pipeline_mode = #tpu.pipeline_mode<synchronous>, transform_indices = @transform_7, window_bounds = array<i64: 9, 512>}, {pipeline_mode = #tpu.pipeline_mode<synchronous>, transform_indices = @transform_8, window_bounds = array<i64: 8, 512>}]} {
    %c0 = arith.constant 0 : index
    %c0_0 = arith.constant 0 : index
    %0 = vector.load %arg2[%c0, %c0_0] : memref<8x8xf32, #tpu.memory_space<vmem>>, vector<8x8xf32>
    %c0_1 = arith.constant 0 : index
    %c0_2 = arith.constant 0 : index
    %1 = vector.load %arg1[%c0_1, %c0_2] : memref<8x512xf32, #tpu.memory_space<vmem>>, vector<8x512xf32>
    %cst = arith.constant dense<0.000000e+00> : vector<8x512xf32>
    %2 = tpu.matmul %0, %1, %cst {dimension_numbers = #tpu.dot_dimension_numbers<[1], [0], [0], [1], [0, 0, 1, 1], [], []>} : vector<8x8xf32>, vector<8x512xf32>, vector<8x512xf32> -> vector<8x512xf32>
    %c0_3 = arith.constant 0 : index
    %c0_4 = arith.constant 0 : index
    %3 = vector.load %arg3[%c0_3, %c0_4] : memref<8x1xf32, #tpu.memory_space<vmem>>, vector<8x1xf32>
    %4 = vector.broadcast %3 : vector<8x1xf32> to vector<8x512xf32>
    %5 = arith.addf %2, %4 : vector<8x512xf32>
    %cst_5 = arith.constant 0.000000e+00 : f32
    %6 = vector.broadcast %cst_5 : f32 to vector<8x512xf32>
    %7 = arith.maximumf %5, %6 : vector<8x512xf32>
    %c0_6 = arith.constant 0 : index
    %c0_7 = arith.constant 0 : index
    %8 = vector.load %arg8[%c0_6, %c0_7] : memref<9x512xf32, #tpu.memory_space<vmem>>, vector<9x512xf32>
    %c4 = arith.constant 4 : index
    %c0_8 = arith.constant 0 : index
    %c0_9 = arith.constant 0 : index
    %9 = vector.load %arg4[%c4, %c0_8, %c0_9] : memref<9x8x8xf32, #tpu.memory_space<vmem>>, vector<1x8x8xf32>
    %10 = vector.shape_cast %9 : vector<1x8x8xf32> to vector<8x8xf32>
    %cst_10 = arith.constant dense<0.000000e+00> : vector<8x512xf32>
    %11 = tpu.matmul %10, %7, %cst_10 {dimension_numbers = #tpu.dot_dimension_numbers<[1], [0], [0], [1], [0, 0, 1, 1], [], []>} : vector<8x8xf32>, vector<8x512xf32>, vector<8x512xf32> -> vector<8x512xf32>
    %c34_i32 = arith.constant 34 : i32
    %12 = tpu.dynamic_rotate %7 by %c34_i32 dim 1 : vector<8x512xf32>, i32 -> vector<8x512xf32>
    %c0_11 = arith.constant 0 : index
    %c0_12 = arith.constant 0 : index
    %c0_13 = arith.constant 0 : index
    %13 = vector.load %arg4[%c0_11, %c0_12, %c0_13] : memref<9x8x8xf32, #tpu.memory_space<vmem>>, vector<1x8x8xf32>
    %14 = vector.shape_cast %13 : vector<1x8x8xf32> to vector<8x8xf32>
    %15 = vector.extract_strided_slice %8 {offsets = [0, 0], sizes = [1, 512], strides = [1, 1]} : vector<9x512xf32> to vector<1x512xf32>
    %16 = vector.broadcast %15 : vector<1x512xf32> to vector<8x512xf32>
    %17 = arith.mulf %12, %16 : vector<8x512xf32>
    %cst_14 = arith.constant dense<0.000000e+00> : vector<8x512xf32>
    %18 = tpu.matmul %14, %17, %cst_14 {dimension_numbers = #tpu.dot_dimension_numbers<[1], [0], [0], [1], [0, 0, 1, 1], [], []>} : vector<8x8xf32>, vector<8x512xf32>, vector<8x512xf32> -> vector<8x512xf32>
    %19 = arith.addf %11, %18 : vector<8x512xf32>
    %c32_i32 = arith.constant 32 : i32
    %20 = tpu.dynamic_rotate %7 by %c32_i32 dim 1 : vector<8x512xf32>, i32 -> vector<8x512xf32>
    %c1 = arith.constant 1 : index
    %c0_15 = arith.constant 0 : index
    %c0_16 = arith.constant 0 : index
    %21 = vector.load %arg4[%c1, %c0_15, %c0_16] : memref<9x8x8xf32, #tpu.memory_space<vmem>>, vector<1x8x8xf32>
    %22 = vector.shape_cast %21 : vector<1x8x8xf32> to vector<8x8xf32>
    %23 = vector.extract_strided_slice %8 {offsets = [1, 0], sizes = [1, 512], strides = [1, 1]} : vector<9x512xf32> to vector<1x512xf32>
    %24 = vector.broadcast %23 : vector<1x512xf32> to vector<8x512xf32>
    %25 = arith.mulf %20, %24 : vector<8x512xf32>
    %cst_17 = arith.constant dense<0.000000e+00> : vector<8x512xf32>
    %26 = tpu.matmul %22, %25, %cst_17 {dimension_numbers = #tpu.dot_dimension_numbers<[1], [0], [0], [1], [0, 0, 1, 1], [], []>} : vector<8x8xf32>, vector<8x512xf32>, vector<8x512xf32> -> vector<8x512xf32>
    %27 = arith.addf %19, %26 : vector<8x512xf32>
    %c30_i32 = arith.constant 30 : i32
    %28 = tpu.dynamic_rotate %7 by %c30_i32 dim 1 : vector<8x512xf32>, i32 -> vector<8x512xf32>
    %c2 = arith.constant 2 : index
    %c0_18 = arith.constant 0 : index
    %c0_19 = arith.constant 0 : index
    %29 = vector.load %arg4[%c2, %c0_18, %c0_19] : memref<9x8x8xf32, #tpu.memory_space<vmem>>, vector<1x8x8xf32>
    %30 = vector.shape_cast %29 : vector<1x8x8xf32> to vector<8x8xf32>
    %31 = vector.extract_strided_slice %8 {offsets = [2, 0], sizes = [1, 512], strides = [1, 1]} : vector<9x512xf32> to vector<1x512xf32>
    %32 = vector.broadcast %31 : vector<1x512xf32> to vector<8x512xf32>
    %33 = arith.mulf %28, %32 : vector<8x512xf32>
    %cst_20 = arith.constant dense<0.000000e+00> : vector<8x512xf32>
    %34 = tpu.matmul %30, %33, %cst_20 {dimension_numbers = #tpu.dot_dimension_numbers<[1], [0], [0], [1], [0, 0, 1, 1], [], []>} : vector<8x8xf32>, vector<8x512xf32>, vector<8x512xf32> -> vector<8x512xf32>
    %35 = arith.addf %27, %34 : vector<8x512xf32>
    %c2_i32 = arith.constant 2 : i32
    %36 = tpu.dynamic_rotate %7 by %c2_i32 dim 1 : vector<8x512xf32>, i32 -> vector<8x512xf32>
    %c3 = arith.constant 3 : index
    %c0_21 = arith.constant 0 : index
    %c0_22 = arith.constant 0 : index
    %37 = vector.load %arg4[%c3, %c0_21, %c0_22] : memref<9x8x8xf32, #tpu.memory_space<vmem>>, vector<1x8x8xf32>
    %38 = vector.shape_cast %37 : vector<1x8x8xf32> to vector<8x8xf32>
    %39 = vector.extract_strided_slice %8 {offsets = [3, 0], sizes = [1, 512], strides = [1, 1]} : vector<9x512xf32> to vector<1x512xf32>
    %40 = vector.broadcast %39 : vector<1x512xf32> to vector<8x512xf32>
    %41 = arith.mulf %36, %40 : vector<8x512xf32>
    %cst_23 = arith.constant dense<0.000000e+00> : vector<8x512xf32>
    %42 = tpu.matmul %38, %41, %cst_23 {dimension_numbers = #tpu.dot_dimension_numbers<[1], [0], [0], [1], [0, 0, 1, 1], [], []>} : vector<8x8xf32>, vector<8x512xf32>, vector<8x512xf32> -> vector<8x512xf32>
    %43 = arith.addf %35, %42 : vector<8x512xf32>
    %c510_i32 = arith.constant 510 : i32
    %44 = tpu.dynamic_rotate %7 by %c510_i32 dim 1 : vector<8x512xf32>, i32 -> vector<8x512xf32>
    %c5 = arith.constant 5 : index
    %c0_24 = arith.constant 0 : index
    %c0_25 = arith.constant 0 : index
    %45 = vector.load %arg4[%c5, %c0_24, %c0_25] : memref<9x8x8xf32, #tpu.memory_space<vmem>>, vector<1x8x8xf32>
    %46 = vector.shape_cast %45 : vector<1x8x8xf32> to vector<8x8xf32>
    %47 = vector.extract_strided_slice %8 {offsets = [5, 0], sizes = [1, 512], strides = [1, 1]} : vector<9x512xf32> to vector<1x512xf32>
    %48 = vector.broadcast %47 : vector<1x512xf32> to vector<8x512xf32>
    %49 = arith.mulf %44, %48 : vector<8x512xf32>
    %cst_26 = arith.constant dense<0.000000e+00> : vector<8x512xf32>
    %50 = tpu.matmul %46, %49, %cst_26 {dimension_numbers = #tpu.dot_dimension_numbers<[1], [0], [0], [1], [0, 0, 1, 1], [], []>} : vector<8x8xf32>, vector<8x512xf32>, vector<8x512xf32> -> vector<8x512xf32>
    %51 = arith.addf %43, %50 : vector<8x512xf32>
    %c482_i32 = arith.constant 482 : i32
    %52 = tpu.dynamic_rotate %7 by %c482_i32 dim 1 : vector<8x512xf32>, i32 -> vector<8x512xf32>
    %c6 = arith.constant 6 : index
    %c0_27 = arith.constant 0 : index
    %c0_28 = arith.constant 0 : index
    %53 = vector.load %arg4[%c6, %c0_27, %c0_28] : memref<9x8x8xf32, #tpu.memory_space<vmem>>, vector<1x8x8xf32>
    %54 = vector.shape_cast %53 : vector<1x8x8xf32> to vector<8x8xf32>
    %55 = vector.extract_strided_slice %8 {offsets = [6, 0], sizes = [1, 512], strides = [1, 1]} : vector<9x512xf32> to vector<1x512xf32>
    %56 = vector.broadcast %55 : vector<1x512xf32> to vector<8x512xf32>
    %57 = arith.mulf %52, %56 : vector<8x512xf32>
    %cst_29 = arith.constant dense<0.000000e+00> : vector<8x512xf32>
    %58 = tpu.matmul %54, %57, %cst_29 {dimension_numbers = #tpu.dot_dimension_numbers<[1], [0], [0], [1], [0, 0, 1, 1], [], []>} : vector<8x8xf32>, vector<8x512xf32>, vector<8x512xf32> -> vector<8x512xf32>
    %59 = arith.addf %51, %58 : vector<8x512xf32>
    %c480_i32 = arith.constant 480 : i32
    %60 = tpu.dynamic_rotate %7 by %c480_i32 dim 1 : vector<8x512xf32>, i32 -> vector<8x512xf32>
    %c7 = arith.constant 7 : index
    %c0_30 = arith.constant 0 : index
    %c0_31 = arith.constant 0 : index
    %61 = vector.load %arg4[%c7, %c0_30, %c0_31] : memref<9x8x8xf32, #tpu.memory_space<vmem>>, vector<1x8x8xf32>
    %62 = vector.shape_cast %61 : vector<1x8x8xf32> to vector<8x8xf32>
    %63 = vector.extract_strided_slice %8 {offsets = [7, 0], sizes = [1, 512], strides = [1, 1]} : vector<9x512xf32> to vector<1x512xf32>
    %64 = vector.broadcast %63 : vector<1x512xf32> to vector<8x512xf32>
    %65 = arith.mulf %60, %64 : vector<8x512xf32>
    %cst_32 = arith.constant dense<0.000000e+00> : vector<8x512xf32>
    %66 = tpu.matmul %62, %65, %cst_32 {dimension_numbers = #tpu.dot_dimension_numbers<[1], [0], [0], [1], [0, 0, 1, 1], [], []>} : vector<8x8xf32>, vector<8x512xf32>, vector<8x512xf32> -> vector<8x512xf32>
    %67 = arith.addf %59, %66 : vector<8x512xf32>
    %c478_i32 = arith.constant 478 : i32
    %68 = tpu.dynamic_rotate %7 by %c478_i32 dim 1 : vector<8x512xf32>, i32 -> vector<8x512xf32>
    %c8 = arith.constant 8 : index
    %c0_33 = arith.constant 0 : index
    %c0_34 = arith.constant 0 : index
    %69 = vector.load %arg4[%c8, %c0_33, %c0_34] : memref<9x8x8xf32, #tpu.memory_space<vmem>>, vector<1x8x8xf32>
    %70 = vector.shape_cast %69 : vector<1x8x8xf32> to vector<8x8xf32>
    %71 = vector.extract_strided_slice %8 {offsets = [8, 0], sizes = [1, 512], strides = [1, 1]} : vector<9x512xf32> to vector<1x512xf32>
    %72 = vector.broadcast %71 : vector<1x512xf32> to vector<8x512xf32>
    %73 = arith.mulf %68, %72 : vector<8x512xf32>
    %cst_35 = arith.constant dense<0.000000e+00> : vector<8x512xf32>
    %74 = tpu.matmul %70, %73, %cst_35 {dimension_numbers = #tpu.dot_dimension_numbers<[1], [0], [0], [1], [0, 0, 1, 1], [], []>} : vector<8x8xf32>, vector<8x512xf32>, vector<8x512xf32> -> vector<8x512xf32>
    %75 = arith.addf %67, %74 : vector<8x512xf32>
    %c0_36 = arith.constant 0 : index
    %c0_37 = arith.constant 0 : index
    %76 = vector.load %arg5[%c0_36, %c0_37] : memref<8x1xf32, #tpu.memory_space<vmem>>, vector<8x1xf32>
    %77 = vector.broadcast %76 : vector<8x1xf32> to vector<8x512xf32>
    %78 = arith.addf %75, %77 : vector<8x512xf32>
    %cst_38 = arith.constant 0.000000e+00 : f32
    %79 = vector.broadcast %cst_38 : f32 to vector<8x512xf32>
    %80 = arith.maximumf %78, %79 : vector<8x512xf32>
    %c0_39 = arith.constant 0 : index
    %c0_40 = arith.constant 0 : index
    %81 = vector.load %arg6[%c0_39, %c0_40] : memref<8x8xf32, #tpu.memory_space<vmem>>, vector<8x8xf32>
    %cst_41 = arith.constant dense<0.000000e+00> : vector<8x512xf32>
    %82 = tpu.matmul %81, %80, %cst_41 {dimension_numbers = #tpu.dot_dimension_numbers<[1], [0], [0], [1], [0, 0, 1, 1], [], []>} : vector<8x8xf32>, vector<8x512xf32>, vector<8x512xf32> -> vector<8x512xf32>
    %c0_42 = arith.constant 0 : index
    %c0_43 = arith.constant 0 : index
    %83 = vector.load %arg7[%c0_42, %c0_43] : memref<8x1xf32, #tpu.memory_space<vmem>>, vector<8x1xf32>
    %84 = vector.broadcast %83 : vector<8x1xf32> to vector<8x512xf32>
    %85 = arith.addf %82, %84 : vector<8x512xf32>
    %c0_44 = arith.constant 0 : index
    %c0_45 = arith.constant 0 : index
    %86 = vector.load %arg1[%c0_44, %c0_45] : memref<8x512xf32, #tpu.memory_space<vmem>>, vector<8x512xf32>
    %87 = arith.addf %85, %86 : vector<8x512xf32>
    %cst_46 = arith.constant 0.000000e+00 : f32
    %88 = vector.broadcast %cst_46 : f32 to vector<8x512xf32>
    %89 = arith.maximumf %87, %88 : vector<8x512xf32>
    %c0_47 = arith.constant 0 : index
    %c0_48 = arith.constant 0 : index
    %90 = vector.load %arg9[%c0_47, %c0_48] : memref<8x512xf32, #tpu.memory_space<vmem>>, vector<8x512xf32>
    tpu.vector_store %arg9[%c0_47, %c0_48], %89 {strides = array<i32>} : memref<8x512xf32, #tpu.memory_space<vmem>>, vector<8x512xf32>,
    return
  }
  func.func @transform_0(%arg0: i32) -> (i32, i32) {
    %c0_i32 = arith.constant 0 : i32
    %c0_i32_0 = arith.constant 0 : i32
    %c0_i32_1 = arith.constant 0 : i32
    return %c0_i32, %c0_i32_0 : i32, i32
  }
  func.func @transform_1(%arg0: i32) -> (i32, i32) {
    %c0_i32 = arith.constant 0 : i32
    %c0_i32_0 = arith.constant 0 : i32
    %c0_i32_1 = arith.constant 0 : i32
    return %c0_i32, %c0_i32_0 : i32, i32
  }
  func.func @transform_2(%arg0: i32) -> (i32, i32) {
    %c0_i32 = arith.constant 0 : i32
    %c0_i32_0 = arith.constant 0 : i32
    %c0_i32_1 = arith.constant 0 : i32
    return %c0_i32, %c0_i32_0 : i32, i32
  }
  func.func @transform_3(%arg0: i32) -> (i32, i32, i32) {
    %c0_i32 = arith.constant 0 : i32
    %c0_i32_0 = arith.constant 0 : i32
    %c0_i32_1 = arith.constant 0 : i32
    %c0_i32_2 = arith.constant 0 : i32
    return %c0_i32, %c0_i32_0, %c0_i32_1 : i32, i32, i32
  }
  func.func @transform_4(%arg0: i32) -> (i32, i32) {
    %c0_i32 = arith.constant 0 : i32
    %c0_i32_0 = arith.constant 0 : i32
    %c0_i32_1 = arith.constant 0 : i32
    return %c0_i32, %c0_i32_0 : i32, i32
  }
  func.func @transform_5(%arg0: i32) -> (i32, i32) {
    %c0_i32 = arith.constant 0 : i32
    %c0_i32_0 = arith.constant 0 : i32
    %c0_i32_1 = arith.constant 0 : i32
    return %c0_i32, %c0_i32_0 : i32, i32
  }
  func.func @transform_6(%arg0: i32) -> (i32, i32) {
    %c0_i32 = arith.constant 0 : i32
    %c0_i32_0 = arith.constant 0 : i32
    %c0_i32_1 = arith.constant 0 : i32
    return %c0_i32, %c0_i32_0 : i32, i32
  }
  func.func @transform_7(%arg0: i32) -> (i32, i32) {
    %c0_i32 = arith.constant 0 : i32
    %c0_i32_0 = arith.constant 0 : i32
    %c0_i32_1 = arith.constant 0 : i32
    return %c0_i32, %c0_i32_0 : i32, i32
  }
  func.func @transform_8(%arg0: i32) -> (i32, i32) {
    %c0_i32 = arith.constant 0 : i32
    %c0_i32_0 = arith.constant 0 : i32
    %c0_i32_1 = arith.constant 0 : i32
    return %c0_i32, %c0_i32_0 : i32, i32
  }
}

</mosaic_0001>

<bundles_post_ra>
// kernel: tpu_custom_call.1
= control target key start
LH: loop header
LB: loop body
LE: loop exit
PB: predicated region body
PF: predicated region fallthrough
CT: control target
= control target key end

     0   :  { %vm41_vm0 = vcmask 64512   ;;  %v2076_v5 = vmov 0.0   ;;  %s2504_s0 = inlined_call_operand.vmem [shape: f32[8,512], index: 0, kind: input, shape index: {}]   ;;  %s2505_s1 = inlined_call_operand.vmem [shape: f32[8,8], index: 1, kind: input, shape index: {}]   ;;  %s2506_s2 = inlined_call_operand.vmem [shape: f32[8,1], index: 2, kind: input, shape index: {}]   ;;  %s2507_s3 = inlined_call_operand.vmem [shape: f32[9,8,8], index: 3, kind: input, shape index: {}]   ;;  %s2508_s4 = inlined_call_operand.vmem [shape: f32[8,1], index: 4, kind: input, shape index: {}]   ;;  %s2509_s5 = inlined_call_operand.vmem [shape: f32[8,8], index: 5, kind: input, shape index: {}]   ;;  %s2510_s6 = inlined_call_operand.vmem [shape: f32[8,1], index: 6, kind: input, shape index: {}]   ;;  %s2511_s7 = inlined_call_operand.vmem [shape: f32[9,512], index: 7, kind: input, shape index: {}]   ;;  %s2512_s8 = inlined_call_operand.hbm [shape: f32[8,512], index: 8, kind: output, shape index: {}]  }
   0x1   :  { %v2135_v0 = vld [vmem:[%s2504_s0 + $0x8] sm:$0xff]  ;;  %v2140_v1 = vld [vmem:[%s2504_s0 + $0x18] sm:$0xff]  ;;  %v2145_v2 = vld [vmem:[%s2504_s0] sm:$0xff]  ;;  %109 = vmatprep.mubr.f32.mxu0 %v2076_v5 }
   0x2   :  { %75 = vmatprep.subr.mxu0 %v2135_v0  ;;  %146 = vmatprep.subr.mxu1 %v2140_v1  ;;  %v2152_v3 = vld [vmem:[%s2504_s0 + $0x10] sm:$0xff]  ;;  %v30_v4 = vld [vmem:[%s2505_s1] sm:$0xff] }
   0x3   :  { %76 = vmatpush1.msra.mxu0 %v2145_v2 }
   0x4   :  { %13 = vsyncpa [#allocation3], 0  ;;  %147 = vmatpush1.msra.mxu1 %v2152_v3  ;;  %180 = vmatprep.mubr.f32.mxu1 %v2076_v5  ;;  %v35_v6 = vld [vmem:[%s2506_s2] sm:$0xff]  ;;  %v2077_v7 = vmov 0   ;;  %s2078_s0 = smov 34   ;;  %s2079_s1 = smov 32   ;;  %v209_v23 = vlaneseq }
   0x5   :  { %2007 = vmatmul.mubr.msk.f32.vlgmr.msra.gmra.mxu0 %vm41_vm0, %v30_v4  ;;  %2008 = vmatmul.mubr.msk.f32.vlgmr.msra.gmra.mxu1 %vm41_vm0, %v30_v4  ;;  %s2080_s2 = smov 30   ;;  %s2081_s17 = smov 2   ;;  %v1830_v21 = vld [vmem:[%s2510_s6] sm:$0xff]  ;;  %v2222_v27 = vld [vmem:[%s2511_s7 + $0x18] sm:$0xff]  ;;  %v2250_v46 = vld [vmem:[%s2511_s7 + $0x8] sm:$0xff] }
   0x6   :  { %2052 = vset.pattern.permute.xlu0 %v2077_v7  ;;  %375 = vmatprep.mubr.f32.mxu1 %v2076_v5  ;;  %s2082_s18 = smov 126   ;;  %s2083_s19 = smov 98   ;;  %v1815_v22 = vld [vmem:[%s2508_s4] sm:$0xff]  ;;  %v2214_v24 = vshrl.u32 %v209_v23, 7  ;;  %v2216_v25 = vand.u32 127, %v209_v23  ;;  %v2255_v47 = vld [vmem:[%s2511_s7 + $0x10] sm:$0xff] }
   0x7   :  { %38 = vperm.xlu0 %2052, %v35_v6   ;;  %304 = vmatprep.mubr.f32.mxu0 %v2076_v5  ;;  %s2084_s20 = smov 96   ;;  %s2085_s21 = smov 94   ;;  %v2241_v43 = vld [vmem:[%s2511_s7] sm:$0xff] }
   0x8   :  { %2053 = vset.pattern.permute.xlu1 %v2077_v7  ;;  %v219_v26 = vsub.s32 0, %v2214_v24  ;;  %vm211_vm1 = vcmp.lt.s32.totalorder %v2216_v25, 34  ;;  %v544_v51 = vsub.s32 1, %v2214_v24  ;;  %vm535_vm2 = vcmp.lt.s32.totalorder %v2216_v25, 32  ;;  %v216_v61 = vld [vmem:[%s2507_s3] sm:$0xff] }
   0x9   :  { %v2267_v55 = vsub.s32 2, %v2214_v24  ;;  %vm719_vm3 = vcmp.lt.s32.totalorder %v2216_v25, 30  ;;  %v2009_v23 = vld [vmem:[%s2507_s3 + $0x20] sm:$0xff]  ;;  %vm903_vm4 = vcmp.lt.s32.totalorder %v2216_v25, 2  ;;  %vm1087_vm5 = vcmp.lt.s32.totalorder %v2216_v25, 126 }
   0xa   :  { %v232_v30 = vrot.slane %v2222_v27, %v219_v26  ;;  %v224_v48 = vrot.slane %v2250_v46, %v219_v26  ;;  %v228_v49 = vrot.slane %v2255_v47, %v219_v26  ;;  %v220_v50 = vrot.slane %v2241_v43, %v219_v26 }
   0xb   :  { %v557_v58 = vrot.slane %v2222_v27, %v544_v51  ;;  %v549_v63 = vrot.slane %v2250_v46, %v544_v51  ;;  %v553_v6 = vrot.slane %v2255_v47, %v544_v51  ;;  %vm1271_vm6 = vcmp.lt.s32.totalorder %v2216_v25, 98 }
   0xc   :  { %vm1455_vm7 = vcmp.lt.s32.totalorder %v2216_v25, 96  ;;  %vm1639_vm8 = vcmp.lt.s32.totalorder %v2216_v25, 94 }
  0x82   :  { %v39_v8 = vpop.permute.xlu0 %38 }
  0xc5   :  { %v111_v9 = vpop.f32.mrf.mxu0  ;;  %v182_v10 = vpop.f32.mrf.mxu1 }
  0xc6   :  { %v112_v11 = vadd.f32 %v111_v9, %v39_v8  ;;  %v183_v12 = vadd.f32 %v182_v10, %v39_v8  ;;  %v545_v10 = vrot.slane %v2241_v43, %v544_v51 }
  0xc7   :  { %v184_v13 = vpop.f32.mrf.mxu1  ;;  %v113_v17 = vpop.f32.mrf.mxu0 }
  0xc8   :  { %v2168_v14 = vmax.f32 %v112_v11, 0.0  ;;  %v2170_v15 = vmax.f32 %v183_v12, 0.0  ;;  %v185_v16 = vadd.f32 %v184_v13, %v39_v8  ;;  %v114_v18 = vadd.f32 %v113_v17, %v39_v8 }
  0xc9   :  { %v733_v11 = vrot.slane %v2250_v46, %v2267_v55  ;;  %v2292_v12 = vsub.s32 3, %v2214_v24  ;;  %v741_v17 = vrot.slane %v2222_v27, %v2267_v55 }
  0xca   :  { %205 = vrot.lane.b32.xlu1 %v2170_v15, %s2078_s0  ;;  %201 = vrot.lane.b32.xlu0 %v2168_v14, %s2078_s0  ;;  %v2174_v19 = vmax.f32 %v185_v16, 0.0  ;;  %v2178_v20 = vmax.f32 %v114_v18, 0.0 }
  0xce   :  { %527 = vrot.lane.b32.xlu1 %v2168_v14, %s2079_s1  ;;  %207 = vrot.lane.b32.xlu0 %v2174_v19, %s2078_s0 }
  0xd2   :  { %531 = vrot.lane.b32.xlu1 %v2170_v15, %s2079_s1  ;;  %529 = vrot.lane.b32.xlu0 %v2178_v20, %s2079_s1 }
  0xd6   :  { %711 = vrot.lane.b32.xlu1 %v2168_v14, %s2080_s2  ;;  %533 = vrot.lane.b32.xlu0 %v2174_v19, %s2079_s1 }
  0xda   :  { %715 = vrot.lane.b32.xlu1 %v2170_v15, %s2080_s2  ;;  %713 = vrot.lane.b32.xlu0 %v2178_v20, %s2080_s2 }
  0xde   :  { %895 = vrot.lane.b32.xlu1 %v2168_v14, %s2081_s17  ;;  %717 = vrot.lane.b32.xlu0 %v2174_v19, %s2080_s2 }
  0xe2   :  { %899 = vrot.lane.b32.xlu1 %v2170_v15, %s2081_s17  ;;  %897 = vrot.lane.b32.xlu0 %v2178_v20, %s2081_s17 }
  0xe6   :  { %203 = vrot.lane.b32.xlu1 %v2178_v20, %s2078_s0  ;;  %901 = vrot.lane.b32.xlu0 %v2174_v19, %s2081_s17 }
  0xea   :  { %1079 = vrot.lane.b32.xlu1 %v2168_v14, %s2082_s18  ;;  %1081 = vrot.lane.b32.xlu0 %v2178_v20, %s2082_s18 }
  0xee   :  { %1083 = vrot.lane.b32.xlu1 %v2170_v15, %s2082_s18  ;;  %1085 = vrot.lane.b32.xlu0 %v2174_v19, %s2082_s18 }
  0xf2   :  { %1263 = vrot.lane.b32.xlu1 %v2168_v14, %s2083_s19  ;;  %1265 = vrot.lane.b32.xlu0 %v2178_v20, %s2083_s19 }
  0xf6   :  { %1267 = vrot.lane.b32.xlu1 %v2170_v15, %s2083_s19  ;;  %1269 = vrot.lane.b32.xlu0 %v2174_v19, %s2083_s19 }
  0xfa   :  { %1447 = vrot.lane.b32.xlu1 %v2168_v14, %s2084_s20  ;;  %1449 = vrot.lane.b32.xlu0 %v2178_v20, %s2084_s20 }
  0xfe   :  { %1451 = vrot.lane.b32.xlu1 %v2170_v15, %s2084_s20  ;;  %1453 = vrot.lane.b32.xlu0 %v2174_v19, %s2084_s20 }
 0x102   :  { %1631 = vrot.lane.b32.xlu1 %v2168_v14, %s2085_s21  ;;  %1633 = vrot.lane.b32.xlu0 %v2178_v20, %s2085_s21 }
 0x106   :  { %1635 = vrot.lane.b32.xlu1 %v2170_v15, %s2085_s21  ;;  %1637 = vrot.lane.b32.xlu0 %v2174_v19, %s2085_s21 }
 0x10a   :  { %1833 = vperm.xlu0 %2052, %v1830_v21   ;;  %1818 = vperm.xlu1 %2053, %v1815_v22  }
 0x13c   :  { %v206_v28 = vpop.permute.xlu1 %205  ;;  %v202_v29 = vpop.permute.xlu0 %201 }
 0x140   :  { %v528_v31 = vpop.permute.xlu1 %527  ;;  %v208_v32 = vpop.permute.xlu0 %207 }
 0x141   :  { %v212_v33 = vsel %vm211_vm1, %v206_v28, %v208_v32  ;;  %v215_v52 = vsel %vm211_vm1, %v208_v32, %v202_v29 }
 0x142   :  { %v236_v34 = vmul.f32 %v232_v30, %v212_v33  ;;  %v233_v62 = vmul.f32 %v220_v50, %v215_v52  ;;  %v917_v30 = vrot.slane %v2250_v46, %v2292_v12 }
 0x144   :  { %v532_v35 = vpop.permute.xlu1 %531  ;;  %341 = vmatprep.subr.mxu1 %v236_v34  ;;  %v530_v36 = vpop.permute.xlu0 %529 }
 0x145   :  { %v538_v7 = vsel %vm535_vm2, %v528_v31, %v530_v36  ;;  %v537_v13 = vsel %vm535_vm2, %v530_v36, %v532_v35 }
 0x146   :  { %v559_v18 = vmul.f32 %v549_v63, %v538_v7 }
 0x148   :  { %v2228_v37 = vpop.permute.xlu1 %711  ;;  %v534_v38 = vpop.permute.xlu0 %533 }
 0x149   :  { %v536_v4 = vsel %vm535_vm2, %v532_v35, %v534_v38  ;;  %v539_v21 = vsel %vm535_vm2, %v534_v38, %v528_v31  ;;  %v925_v31 = vrot.slane %v2222_v27, %v2292_v12  ;;  %v2342_v38 = vsub.s32 5, %v2214_v24 }
 0x14a   :  { %v561_v16 = vmul.f32 %v557_v58, %v536_v4  ;;  %v558_v32 = vmul.f32 %v545_v10, %v539_v21 }
 0x14b   :  { %v1101_v51 = vrot.slane %v2250_v46, %v2342_v38  ;;  %v1109_v52 = vrot.slane %v2222_v27, %v2342_v38 }
 0x14c   :  { %v2230_v39 = vpop.permute.xlu1 %715  ;;  %v2232_v40 = vpop.permute.xlu0 %713 }
 0x14d   :  { %v722_v26 = vsel %vm719_vm3, %v2228_v37, %v2232_v40 }
 0x14e   :  { %v743_v34 = vmul.f32 %v733_v11, %v722_v26 }
 0x150   :  { %v2234_v41 = vpop.permute.xlu1 %895  ;;  %v2236_v42 = vpop.permute.xlu0 %717 }
 0x151   :  { %v720_v22 = vsel %vm719_vm3, %v2230_v39, %v2236_v42  ;;  %v723_v35 = vsel %vm719_vm3, %v2236_v42, %v2228_v37  ;;  %v913_v42 = vrot.slane %v2241_v43, %v2292_v12 }
 0x152   :  { %v745_v33 = vmul.f32 %v741_v17, %v720_v22  ;;  %v1464_v17 = vsub.s32 7, %v2214_v24 }
 0x154   :  { %v2243_v44 = vpop.permute.xlu1 %899  ;;  %v2245_v45 = vpop.permute.xlu0 %897  ;;  %v1469_v26 = vrot.slane %v2250_v46, %v1464_v17 }
 0x155   :  { %v906_v37 = vsel %vm903_vm4, %v2234_v41, %v2245_v45 }
 0x158   :  { %v204_v53 = vpop.permute.xlu1 %203  ;;  %v2263_v54 = vpop.permute.xlu0 %901 }
 0x159   :  { %v213_v56 = vsel %vm211_vm1, %v204_v53, %v206_v28  ;;  %v214_v57 = vsel %vm211_vm1, %v202_v29, %v204_v53  ;;  %v729_v28 = vrot.slane %v2241_v43, %v2267_v55  ;;  %v560_v29 = vmul.f32 %v553_v6, %v537_v13 }
 0x15a   :  { %v234_v59 = vmul.f32 %v224_v48, %v214_v57  ;;  %v235_v60 = vmul.f32 %v228_v49, %v213_v56  ;;  %v904_v36 = vsel %vm903_vm4, %v2243_v44, %v2263_v54  ;;  %v927_v57 = vmul.f32 %v917_v30, %v906_v37  ;;  %v2026_v37 = vld [vmem:[%s2507_s3 + $0x30] sm:$0xff] }
 0x15b   :  { %v742_v53 = vmul.f32 %v729_v28, %v723_v35  ;;  %v929_v56 = vmul.f32 %v925_v31, %v904_v36  ;;  %v907_v58 = vsel %vm903_vm4, %v2263_v54, %v2234_v41  ;;  %v1105_v54 = vrot.slane %v2255_v47, %v2342_v38 }
 0x15c   :  { %v2283_v8 = vpop.permute.xlu1 %1079  ;;  %270 = vmatprep.subr.mxu0 %v234_v59  ;;  %342 = vmatpush1.msra.mxu1 %v235_v60  ;;  %v2285_v9 = vpop.permute.xlu0 %1081  ;;  %v2378_v60 = vsub.s32 6, %v2214_v24  ;;  %v926_v7 = vmul.f32 %v913_v42, %v907_v58  ;;  %v1473_v31 = vrot.slane %v2255_v47, %v1464_v17 }
 0x15d   :  { %271 = vmatpush1.msra.mxu0 %v233_v62  ;;  %2011 = vmatmul.mubr.msk.f32.vlgmr.msra.gmra.mxu1 %vm41_vm0, %v216_v61 }
 0x15e   :  { %486 = vmatprep.subr.mxu1 %v2174_v19  ;;  %2010 = vmatmul.mubr.msk.f32.vlgmr.msra.gmra.mxu0 %vm41_vm0, %v216_v61  ;;  %v737_v19 = vrot.slane %v2255_v47, %v2267_v55  ;;  %v905_v55 = vsel %vm903_vm4, %v2245_v45, %v2243_v44  ;;  %v2017_v44 = vld [vmem:[%s2507_s3 + $0x10] sm:$0xff]  ;;  %v1097_v45 = vrot.slane %v2241_v43, %v2342_v38 }
 0x15f   :  { %415 = vmatprep.subr.mxu0 %v2178_v20  ;;  %487 = vmatpush1.msra.mxu1 %v2170_v15  ;;  %v1285_v4 = vrot.slane %v2250_v46, %v2378_v60  ;;  %v1293_v6 = vrot.slane %v2222_v27, %v2378_v60  ;;  %v1281_v21 = vrot.slane %v2241_v43, %v2378_v60  ;;  %v2023_v46 = vld [vmem:[%s2507_s3 + $0x28] sm:$0xff] }
 0x160   :  { %416 = vmatpush1.msra.mxu0 %v2168_v14  ;;  %666 = vmatprep.subr.mxu1 %v561_v16  ;;  %v1084_v20 = vpop.permute.xlu1 %1083  ;;  %v1086_v15 = vpop.permute.xlu0 %1085  ;;  %v721_v14 = vsel %vm719_vm3, %v2232_v40, %v2230_v39  ;;  %v2014_v39 = vld [vmem:[%s2507_s3 + $0x8] sm:$0xff]  ;;  %v921_v40 = vrot.slane %v2255_v47, %v2292_v12  ;;  %v1090_v12 = vsel %vm1087_vm5, %v2283_v8, %v2285_v9 }
 0x161   :  { %520 = vmatprep.mubr.f32.mxu1 %v2076_v5  ;;  %595 = vmatprep.subr.mxu0 %v559_v18  ;;  %v744_v50 = vmul.f32 %v737_v19, %v721_v14  ;;  %v1091_v59 = vsel %vm1087_vm5, %v1086_v15, %v2283_v8  ;;  %v1089_v41 = vsel %vm1087_vm5, %v2285_v9, %v1084_v20  ;;  %v2020_v18 = vld [vmem:[%s2507_s3 + $0x18] sm:$0xff] }
 0x162   :  { %449 = vmatprep.mubr.f32.mxu0 %v2076_v5  ;;  %2013 = vmatmul.mubr.msk.f32.vlgmr.msra.gmra.mxu1 %vm41_vm0, %v2009_v23  ;;  %v928_v63 = vmul.f32 %v921_v40, %v905_v55  ;;  %v1088_v10 = vsel %vm1087_vm5, %v1084_v20, %v1086_v15  ;;  %v1113_v11 = vmul.f32 %v1109_v52, %v1091_v59  ;;  %v2036_v52 = vld [vmem:[%s2511_s7 + $0x38] ss:$0 sm:$0xff]  ;;  %v2033_v55 = vld [vmem:[%s2511_s7 + $0x20] ss:$0 sm:$0xff] }
 0x163   :  { %667 = vmatpush1.msra.mxu1 %v560_v29  ;;  %2012 = vmatmul.mubr.msk.f32.vlgmr.msra.gmra.mxu0 %vm41_vm0, %v2009_v23  ;;  %v1111_v13 = vmul.f32 %v1101_v51, %v1089_v41  ;;  %v1289_v9 = vrot.slane %v2255_v47, %v2378_v60  ;;  %v1112_v19 = vmul.f32 %v1105_v54, %v1088_v10  ;;  %v2035_v51 = vld [vmem:[%s2511_s7 + $0x30] ss:$0 sm:$0xff] }
 0x164   :  { %596 = vmatpush1.msra.mxu0 %v558_v32  ;;  %850 = vmatprep.subr.mxu1 %v745_v33  ;;  %v2356_v48 = vpop.permute.xlu1 %1263  ;;  %v1266_v49 = vpop.permute.xlu0 %1265  ;;  %v1110_v28 = vmul.f32 %v1097_v45, %v1090_v12  ;;  %v1477_v15 = vrot.slane %v2222_v27, %v1464_v17  ;;  %v1465_v14 = vrot.slane %v2241_v43, %v1464_v17 }
 0x165   :  { %779 = vmatprep.subr.mxu0 %v743_v34  ;;  %700 = vmatprep.mubr.f32.mxu1 %v2076_v5  ;;  %v1274_v29 = vsel %vm1271_vm6, %v2356_v48, %v1266_v49 }
 0x166   :  { %629 = vmatprep.mubr.f32.mxu0 %v2076_v5  ;;  %2016 = vmatmul.mubr.msk.f32.vlgmr.msra.gmra.mxu1 %vm41_vm0, %v2014_v39  ;;  %v1294_v36 = vmul.f32 %v1281_v21, %v1274_v29 }
 0x167   :  { %851 = vmatpush1.msra.mxu1 %v744_v50  ;;  %2015 = vmatmul.mubr.msk.f32.vlgmr.msra.gmra.mxu0 %vm41_vm0, %v2014_v39  ;;  %v2034_v50 = vld [vmem:[%s2511_s7 + $0x28] ss:$0 sm:$0xff] }
 0x168   :  { %780 = vmatpush1.msra.mxu0 %v742_v53  ;;  %1034 = vmatprep.subr.mxu1 %v929_v56  ;;  %v1268_v61 = vpop.permute.xlu1 %1267  ;;  %v1270_v62 = vpop.permute.xlu0 %1269  ;;  %v2029_v53 = vld [vmem:[%s2507_s3 + $0x38] sm:$0xff] }
 0x169   :  { %963 = vmatprep.subr.mxu0 %v927_v57  ;;  %884 = vmatprep.mubr.f32.mxu1 %v2076_v5  ;;  %v1275_v16 = vsel %vm1271_vm6, %v1270_v62, %v2356_v48  ;;  %v1273_v8 = vsel %vm1271_vm6, %v1266_v49, %v1268_v61  ;;  %v1272_v24 = vsel %vm1271_vm6, %v1268_v61, %v1270_v62  ;;  %v2032_v62 = vld [vmem:[%s2507_s3 + $0x40] sm:$0xff] }
 0x16a   :  { %813 = vmatprep.mubr.f32.mxu0 %v2076_v5  ;;  %2019 = vmatmul.mubr.msk.f32.vlgmr.msra.gmra.mxu1 %vm41_vm0, %v2017_v44  ;;  %v1297_v20 = vmul.f32 %v1293_v6, %v1275_v16  ;;  %v1295_v30 = vmul.f32 %v1285_v4, %v1273_v8  ;;  %v1296_v32 = vmul.f32 %v1289_v9, %v1272_v24 }
 0x16b   :  { %1035 = vmatpush1.msra.mxu1 %v928_v63  ;;  %2018 = vmatmul.mubr.msk.f32.vlgmr.msra.gmra.mxu0 %vm41_vm0, %v2017_v44 }
 0x16c   :  { %964 = vmatpush1.msra.mxu0 %v926_v7  ;;  %1218 = vmatprep.subr.mxu1 %v1113_v11  ;;  %v1448_v22 = vpop.permute.xlu1 %1447  ;;  %v1450_v23 = vpop.permute.xlu0 %1449 }
 0x16d   :  { %1147 = vmatprep.subr.mxu0 %v1111_v13  ;;  %1068 = vmatprep.mubr.f32.mxu1 %v2076_v5  ;;  %v1458_v43 = vsel %vm1455_vm7, %v1448_v22, %v1450_v23 }
 0x16e   :  { %997 = vmatprep.mubr.f32.mxu0 %v2076_v5  ;;  %2022 = vmatmul.mubr.msk.f32.vlgmr.msra.gmra.mxu1 %vm41_vm0, %v2020_v18  ;;  %v1478_v49 = vmul.f32 %v1465_v14, %v1458_v43 }
 0x16f   :  { %1219 = vmatpush1.msra.mxu1 %v1112_v19  ;;  %2021 = vmatmul.mubr.msk.f32.vlgmr.msra.gmra.mxu0 %vm41_vm0, %v2020_v18 }
 0x170   :  { %1148 = vmatpush1.msra.mxu0 %v1110_v28  ;;  %1402 = vmatprep.subr.mxu1 %v1297_v20  ;;  %v1452_v27 = vpop.permute.xlu1 %1451  ;;  %v1454_v33 = vpop.permute.xlu0 %1453 }
 0x171   :  { %1331 = vmatprep.subr.mxu0 %v1295_v30  ;;  %v1457_v34 = vsel %vm1455_vm7, %v1450_v23, %v1452_v27  ;;  %1252 = vmatprep.mubr.f32.mxu1 %v2076_v5  ;;  %v1456_v47 = vsel %vm1455_vm7, %v1452_v27, %v1454_v33  ;;  %v1459_v35 = vsel %vm1455_vm7, %v1454_v33, %v1448_v22 }
 0x172   :  { %v1479_v38 = vmul.f32 %v1469_v26, %v1457_v34  ;;  %v1481_v39 = vmul.f32 %v1477_v15, %v1459_v35  ;;  %1181 = vmatprep.mubr.f32.mxu0 %v2076_v5  ;;  %2025 = vmatmul.mubr.msk.f32.vlgmr.msra.gmra.mxu1 %vm41_vm0, %v2023_v46  ;;  %v1480_v40 = vmul.f32 %v1473_v31, %v1456_v47 }
 0x173   :  { %1403 = vmatpush1.msra.mxu1 %v1296_v32  ;;  %2024 = vmatmul.mubr.msk.f32.vlgmr.msra.gmra.mxu0 %vm41_vm0, %v2023_v46 }
 0x174   :  { %1332 = vmatpush1.msra.mxu0 %v1294_v36  ;;  %v1632_v42 = vpop.permute.xlu1 %1631  ;;  %1436 = vmatprep.mubr.f32.mxu1 %v2076_v5  ;;  %v1634_v48 = vpop.permute.xlu0 %1633 }
 0x175   :  { %1515 = vmatprep.subr.mxu0 %v1479_v38  ;;  %1586 = vmatprep.subr.mxu1 %v1481_v39  ;;  %v1642_v56 = vsel %vm1639_vm8, %v1632_v42, %v1634_v48 }
 0x176   :  { %1365 = vmatprep.mubr.f32.mxu0 %v2076_v5  ;;  %2028 = vmatmul.mubr.msk.f32.vlgmr.msra.gmra.mxu1 %vm41_vm0, %v2026_v37  ;;  %v1662_v61 = vmul.f32 %v2033_v55, %v1642_v56 }
 0x177   :  { %1587 = vmatpush1.msra.mxu1 %v1480_v40  ;;  %2027 = vmatmul.mubr.msk.f32.vlgmr.msra.gmra.mxu0 %vm41_vm0, %v2026_v37 }
 0x178   :  { %1516 = vmatpush1.msra.mxu0 %v1478_v49  ;;  %v1636_v57 = vpop.permute.xlu1 %1635  ;;  %1620 = vmatprep.mubr.f32.mxu1 %v2076_v5  ;;  %v1638_v58 = vpop.permute.xlu0 %1637 }
 0x179   :  { %v1641_v59 = vsel %vm1639_vm8, %v1634_v48, %v1636_v57  ;;  %v1640_v60 = vsel %vm1639_vm8, %v1636_v57, %v1638_v58  ;;  %v1643_v44 = vsel %vm1639_vm8, %v1638_v58, %v1632_v42  ;;  %1549 = vmatprep.mubr.f32.mxu0 %v2076_v5 }
 0x17a   :  { %v1663_v45 = vmul.f32 %v2034_v50, %v1641_v59  ;;  %v1664_v41 = vmul.f32 %v2035_v51, %v1640_v60  ;;  %v1665_v54 = vmul.f32 %v2036_v52, %v1643_v44  ;;  %2031 = vmatmul.mubr.msk.f32.vlgmr.msra.gmra.mxu1 %vm41_vm0, %v2029_v53 }
 0x17b   :  { %2030 = vmatmul.mubr.msk.f32.vlgmr.msra.gmra.mxu0 %vm41_vm0, %v2029_v53  ;;  %1804 = vmatprep.mubr.f32.mxu1 %v2076_v5 }
 0x17c   :  { %1699 = vmatprep.subr.mxu0 %v1663_v45  ;;  %1770 = vmatprep.subr.mxu1 %v1665_v54 }
 0x17d   :  { %1700 = vmatpush1.msra.mxu0 %v1662_v61  ;;  %1733 = vmatprep.mubr.f32.mxu0 %v2076_v5 }
 0x17e   :  { %1771 = vmatpush1.msra.mxu1 %v1664_v41 }
 0x17f   :  { %2037 = vmatmul.mubr.msk.f32.vlgmr.msra.gmra.mxu0 %vm41_vm0, %v2032_v62  ;;  %2038 = vmatmul.mubr.msk.f32.vlgmr.msra.gmra.mxu1 %vm41_vm0, %v2032_v62 }
 0x180   :  { %1903 = vmatprep.mubr.f32.mxu0 %v2076_v5  ;;  %1974 = vmatprep.mubr.f32.mxu1 %v2076_v5 }
 0x21d   :  { %v377_v25 = vpop.f32.mrf.mxu1 }
 0x21e   :  { %v306_v63 = vpop.f32.mrf.mxu0 }
 0x21f   :  { %v379_v4 = vpop.f32.mrf.mxu1 }
 0x220   :  { %v308_v6 = vpop.f32.mrf.mxu0 }
 0x222   :  { %v522_v7 = vpop.f32.mrf.mxu1 }
 0x223   :  { %v451_v10 = vpop.f32.mrf.mxu0  ;;  %v523_v26 = vadd.f32 %v522_v7, %v377_v25  ;;  %v1819_v7 = vpop.permute.xlu1 %1818 }
 0x224   :  { %v524_v11 = vpop.f32.mrf.mxu1  ;;  %v452_v28 = vadd.f32 %v451_v10, %v306_v63 }
 0x225   :  { %v453_v12 = vpop.f32.mrf.mxu0  ;;  %v525_v29 = vadd.f32 %v524_v11, %v379_v4 }
 0x226   :  { %v702_v13 = vpop.f32.mrf.mxu1  ;;  %v454_v30 = vadd.f32 %v453_v12, %v308_v6 }
 0x227   :  { %v631_v16 = vpop.f32.mrf.mxu0  ;;  %v709_v31 = vadd.f32 %v702_v13, %v523_v26 }
 0x228   :  { %v704_v17 = vpop.f32.mrf.mxu1  ;;  %v707_v46 = vadd.f32 %v631_v16, %v452_v28 }
 0x229   :  { %v633_v18 = vpop.f32.mrf.mxu0  ;;  %v710_v27 = vadd.f32 %v704_v17, %v525_v29 }
 0x22a   :  { %v886_v21 = vpop.f32.mrf.mxu1  ;;  %v708_v33 = vadd.f32 %v633_v18, %v454_v30 }
 0x22b   :  { %v815_v8 = vpop.f32.mrf.mxu0  ;;  %v893_v34 = vadd.f32 %v886_v21, %v709_v31 }
 0x22c   :  { %v888_v9 = vpop.f32.mrf.mxu1  ;;  %v891_v47 = vadd.f32 %v815_v8, %v707_v46 }
 0x22d   :  { %v817_v22 = vpop.f32.mrf.mxu0  ;;  %v894_v38 = vadd.f32 %v888_v9, %v710_v27 }
 0x22e   :  { %v1070_v23 = vpop.f32.mrf.mxu1  ;;  %v892_v39 = vadd.f32 %v817_v22, %v708_v33 }
 0x22f   :  { %v999_v19 = vpop.f32.mrf.mxu0  ;;  %v1077_v43 = vadd.f32 %v1070_v23, %v893_v34 }
 0x230   :  { %v1072_v24 = vpop.f32.mrf.mxu1  ;;  %v1075_v40 = vadd.f32 %v999_v19, %v891_v47  ;;  %v1829_v19 = vld [vmem:[%s2509_s5] sm:$0xff]  ;;  %s2086_s5 = smov [#allocation2]  }
 0x231   :  { %v1001_v5 = vpop.f32.mrf.mxu0  ;;  %v1078_v48 = vadd.f32 %v1072_v24, %v894_v38  ;;  %v1834_v24 = vpop.permute.xlu0 %1833  ;;  %s1999_s9 = sshll.u32 %s2086_s5, 4  ;;  %s2000_s9 = int_to_ptr.vmem [resolvable:$true] %s1999_s9 }
 0x232   :  { %v1254_v20 = vpop.f32.mrf.mxu1  ;;  %v1076_v49 = vadd.f32 %v1001_v5, %v892_v39  ;;  %s2054_s10 = scalar_lea.vmem %s2000_s9, 512  ;;  %p2059_p1 = scmp.lt.s32.totalorder %s2000_s9, %s2000_s9 }
 0x233   :  { %v1183_v15 = vpop.f32.mrf.mxu0  ;;  %v1261_v50 = vadd.f32 %v1254_v20, %v1077_v43  ;;  %p2055_p0 = scmp.ne.s32.totalorder %s2000_s9, %s2054_s10  ;;  %p2060_p2 = scmp.lt.s32.totalorder %s2054_s10, %s2054_s10 }
 0x234   :  { %v1256_v32 = vpop.f32.mrf.mxu1  ;;  %v1259_v51 = vadd.f32 %v1183_v15, %v1075_v40 }
 0x235   :  { %v1185_v14 = vpop.f32.mrf.mxu0  ;;  %v1262_v55 = vadd.f32 %v1256_v32, %v1078_v48  ;;  %p2061_p3 = por %p2060_p2, %p2059_p1 }
 0x236   :  { %v1438_v35 = vpop.f32.mrf.mxu1  ;;  %v1260_v56 = vadd.f32 %v1185_v14, %v1076_v49 }
 0x237   :  { %v1367_v36 = vpop.f32.mrf.mxu0  ;;  %v1445_v57 = vadd.f32 %v1438_v35, %v1261_v50  ;;  %p2062_p4 = pnand %p2061_p3, %p2055_p0 }
 0x238   :  { %v1440_v37 = vpop.f32.mrf.mxu1  ;;  %v1443_v58 = vadd.f32 %v1367_v36, %v1259_v51 }
 0x239   :  { %v1369_v42 = vpop.f32.mrf.mxu0  ;;  %v1446_v44 = vadd.f32 %v1440_v37, %v1262_v55 }
 0x23a   :  { %v1622_v52 = vpop.f32.mrf.mxu1  ;;  %v1444_v45 = vadd.f32 %v1369_v42, %v1260_v56 }
 0x23b   :  { %v1551_v53 = vpop.f32.mrf.mxu0  ;;  %v1629_v41 = vadd.f32 %v1622_v52, %v1445_v57 }
 0x23c   :  { %v1624_v59 = vpop.f32.mrf.mxu1  ;;  %v1627_v54 = vadd.f32 %v1551_v53, %v1443_v58 }
 0x23d   :  { %v1553_v60 = vpop.f32.mrf.mxu0  ;;  %v1630_v25 = vadd.f32 %v1624_v59, %v1446_v44 }
 0x23e   :  { %v1628_v63 = vadd.f32 %v1553_v60, %v1444_v45 }
 0x23f   :  { %v1735_v61 = vpop.f32.mrf.mxu0  ;;  %v1806_v62 = vpop.f32.mrf.mxu1 }
 0x240   :  { %v1811_v4 = vadd.f32 %v1735_v61, %v1627_v54  ;;  %v1813_v6 = vadd.f32 %v1806_v62, %v1629_v41 }
 0x241   :  { %v1737_v10 = vpop.f32.mrf.mxu0  ;;  %v1808_v11 = vpop.f32.mrf.mxu1 }
 0x242   :  { %v1812_v12 = vadd.f32 %v1737_v10, %v1628_v63  ;;  %v1814_v13 = vadd.f32 %v1808_v11, %v1630_v25  ;;  %v1821_v16 = vadd.f32 %v1819_v7, %v1811_v4  ;;  %v1823_v17 = vadd.f32 %v1819_v7, %v1813_v6 }
 0x244   :  { %v1822_v18 = vadd.f32 %v1819_v7, %v1812_v12  ;;  %v1824_v21 = vadd.f32 %v1819_v7, %v1814_v13  ;;  %v1825_v22 = vmax.f32 %v1821_v16, 0.0  ;;  %v1827_v23 = vmax.f32 %v1823_v17, 0.0 }
 0x246   :  { %v1826_v8 = vmax.f32 %v1822_v18, 0.0  ;;  %v1828_v9 = vmax.f32 %v1824_v21, 0.0 }
 0x248   :  { %1869 = vmatprep.subr.mxu0 %v1826_v8  ;;  %1940 = vmatprep.subr.mxu1 %v1828_v9 }
 0x249   :  { %1870 = vmatpush1.msra.mxu0 %v1825_v22  ;;  %1941 = vmatpush1.msra.mxu1 %v1827_v23 }
 0x24a   :  { %2039 = vmatmul.mubr.msk.f32.vlgmr.msra.gmra.mxu0 %vm41_vm0, %v1829_v19  ;;  %2040 = vmatmul.mubr.msk.f32.vlgmr.msra.gmra.mxu1 %vm41_vm0, %v1829_v19 }
 0x30a   :  { %v1905_v5 = vpop.f32.mrf.mxu0  ;;  %v1976_v26 = vpop.f32.mrf.mxu1 }
 0x30b   :  { %v1906_v28 = vadd.f32 %v1905_v5, %v1834_v24  ;;  %v1977_v20 = vadd.f32 %v1976_v26, %v1834_v24 }
 0x30c   :  { %v1907_v15 = vpop.f32.mrf.mxu0  ;;  %v1978_v29 = vpop.f32.mrf.mxu1 }
 0x30d   :  { %v1981_v30 = vadd.f32 %v1906_v28, %v2145_v2  ;;  %v1983_v31 = vadd.f32 %v1977_v20, %v2152_v3  ;;  %v1908_v46 = vadd.f32 %v1907_v15, %v1834_v24  ;;  %v1979_v32 = vadd.f32 %v1978_v29, %v1834_v24 }
 0x30f   :  { %v1985_v14 = vmax.f32 %v1981_v30, 0.0  ;;  %v1987_v27 = vmax.f32 %v1983_v31, 0.0  ;;  %v1982_v33 = vadd.f32 %v1908_v46, %v2135_v0  ;;  %v1984_v34 = vadd.f32 %v1979_v32, %v2140_v1 }
 0x311   :  { %1989 = vst [vmem:[#allocation2] sm:$0xff] %v1985_v14  ;;  %1991 = vst [vmem:[#allocation2 + $0x10] sm:$0xff] %v1987_v27  ;;  %v1986_v47 = vmax.f32 %v1982_v33, 0.0  ;;  %v1988_v35 = vmax.f32 %v1984_v34, 0.0 }
 0x313   :  { %1990 = vst [vmem:[#allocation2 + $0x8] sm:$0xff] %v1986_v47  ;;  %1992 = vst [vmem:[#allocation2 + $0x18] sm:$0xff] %v1988_v35 }
 0x314   :  { %2065 = shalt.err (!%p2062_p4)
}
 0x315   :  { %2002 = dma.vmem_to_hbm [thread:$0]  %s2000_s9, 512, %s2512_s8, [#allocation3]  }
 0x316   :  { %2074 = dma.done.wait [#allocation3], 512  }
 0x317   :  { %2075 = vsyncadd [#allocation3], 4294966784 }
 0x318   :  { %2006 = vsyncpa [#allocation3], 1 }

</bundles_post_ra>
